<compile_context>
chip_gen: v7x
topology: tpu7x:2x2x1
jax: 0.10.0
libtpu: 0.0.40
codegen_flags: <defaults>
</compile_context>

<pallas_src>
import jax
import jax.numpy as jnp
import numpy as np
from jax.experimental import pallas as pl
from jax.experimental.pallas import tpu as pltpu


def _round_up(a, m):
    return ((a + m - 1) // m) * m


def _make_kernel(shifts, fc_pad):
    """shifts: 8 static flat shifts in (dd, dh, dw) order (same for every parity)."""

    def kernel(x_ref, w_ref, b_ref, o_ref):
        # x_ref : (1, 8, C_in_pad, Fpad)        parity-split input, one sample
        # w_ref : (8, C_out_pad, 8*C_in_pad)    per-parity grouped weights
        # b_ref : (C_out_pad, 1)                bias column
        # o_ref : (1, C_out_pad, Fc_pad)        channel-major, lane-dense output
        acc = None
        for p in range(8):
            # Stack the 8 shifted views of this parity plane along the
            # contraction axis (each view is a full 8-sublane tile, so this is
            # just vreg grouping, not data movement).
            a_p = jnp.concatenate(
                [x_ref[0, p, :, s:s + fc_pad] for s in shifts], axis=0)
            d = jnp.dot(w_ref[p], a_p, preferred_element_type=jnp.float32)
            acc = d if acc is None else acc + d
        o_ref[0] = (acc + b_ref[...]).astype(o_ref.dtype)

    return kernel


def conv_421_pallas(x, weight, bias=None):
    """3D conv, kernel_size=4, stride=2, padding=1, with bias.

    x:      (N, C_in, D, H, W) float32
    weight: (C_out, C_in, 4, 4, 4) float32
    bias:   (C_out,) float32 or None
    returns (N, C_out, Do, Ho, Wo) float32  (NCDHW)
    """
    N, C_in, D, H, W = x.shape
    C_out = weight.shape[0]
    K, S, P = 4, 2, 1
    Do = (D + 2 * P - K) // S + 1
    Ho = (H + 2 * P - K) // S + 1
    Wo = (W + 2 * P - K) // S + 1
    Dp, Hp, Wp = Do + 1, Ho + 1, Wo + 1          # per-parity spatial extents
    HW = Hp * Wp

    C_in_pad = _round_up(C_in, 8)
    C_out_pad = _round_up(C_out, 8)
    Fc = Do * HW                                  # flat output length we compute
    Fc_pad = _round_up(Fc, 128)                   # lane-dense, 128-aligned
    s_max = HW + Wp + 1                           # largest flat shift among taps
    F_real = Dp * HW                              # real flat length per parity
    Fpad = _round_up(max(F_real, Fc_pad + s_max), 128)

    if bias is None:
        bias = jnp.zeros((C_out,), x.dtype)

    # ---- layout plumbing (one pass over the input, no 8x im2col blow-up) ----
    x_pad = jnp.pad(x, ((0, 0), (0, 0), (P, P), (P, P), (P, P)))
    x_pad = x_pad[:, :, :2 * Dp, :2 * Hp, :2 * Wp]
    xr = x_pad.reshape(N, C_in, Dp, 2, Hp, 2, Wp, 2)
    # -> (N, parity_d, parity_h, parity_w, C_in, Dp, Hp, Wp)
    xp = jnp.transpose(xr, (0, 3, 5, 7, 1, 2, 4, 6)).reshape(N, 8, C_in, F_real)
    xp = jnp.pad(xp, ((0, 0), (0, 0),
                      (0, C_in_pad - C_in), (0, Fpad - F_real)))

    # ---- per-parity grouped weights: (8, C_out_pad, 8*C_in_pad) ----
    # kd = 2*dd + pd  (likewise kh, kw); columns ordered shift-major, C_in-minor.
    w = weight.reshape(C_out, C_in, 2, 2, 2, 2, 2, 2)   # (co,ci,dd,pd,dh,ph,dw,pw)
    w = jnp.transpose(w, (3, 5, 7, 0, 2, 4, 6, 1))      # (pd,ph,pw,co,dd,dh,dw,ci)
    w = w.reshape(8, C_out, 8, C_in)
    w = jnp.pad(w, ((0, 0), (0, C_out_pad - C_out), (0, 0),
                    (0, C_in_pad - C_in)))
    w_g = w.reshape(8, C_out_pad, 8 * C_in_pad)

    b2d = jnp.pad(bias.astype(jnp.float32).reshape(C_out, 1),
                  ((0, C_out_pad - C_out), (0, 0)))

    # Static flat shifts within a parity plane, (dd, dh, dw) order.
    shifts = tuple(dd * HW + dh * Wp + dw
                   for dd in (0, 1) for dh in (0, 1) for dw in (0, 1))

    # ---- explicit VMEM budget (double-buffered blocks + transients) ----
    vmem_bytes = (2 * 8 * C_in_pad * Fpad * 4            # input block x2
                  + 2 * C_out_pad * Fc_pad * 4           # output block x2
                  + 2 * 8 * C_out_pad * 8 * C_in_pad * 4  # weights x2
                  + 2 * C_out_pad * 4                    # bias x2
                  + 8 * C_in_pad * Fc_pad * 4            # stacked-tap slab
                  + C_out_pad * Fc_pad * 4)              # f32 accumulator
    vmem_limit = max(16 << 20, min(int(1.3 * vmem_bytes) + (2 << 20), 96 << 20))

    kernel = _make_kernel(shifts, Fc_pad)

    out_flat = pl.pallas_call(
        kernel,
        out_shape=jax.ShapeDtypeStruct((N, C_out_pad, Fc_pad), jnp.float32),
        grid_spec=pltpu.PrefetchScalarGridSpec(
            num_scalar_prefetch=0,
            grid=(N,),
            in_specs=[
                pl.BlockSpec((1, 8, C_in_pad, Fpad), lambda n: (n, 0, 0, 0)),
                pl.BlockSpec((8, C_out_pad, 8 * C_in_pad),
                             lambda n: (0, 0, 0)),
                pl.BlockSpec((C_out_pad, 1), lambda n: (0, 0)),
            ],
            out_specs=pl.BlockSpec((1, C_out_pad, Fc_pad), lambda n: (n, 0, 0)),
        ),
        compiler_params=pltpu.CompilerParams(
            dimension_semantics=("parallel",),
            vmem_limit_bytes=vmem_limit,
        ),
    )(xp, w_g, b2d)

    # Channel-major output -> NCDHW is just a slice + reshape (no transpose).
    out = out_flat[:, :C_out, :Fc].reshape(N, C_out, Do, Hp, Wp)
    return out[:, :, :, :Ho, :Wo].astype(x.dtype)


if __name__ == "__main__":
    # Small shapes consistent with the module: N=2, C_in=4, C_out=8, D=H=W=8.
    key = jax.random.PRNGKey(0)
    kx, kw, kb = jax.random.split(key, 3)

    N, C_in, C_out = 2, 4, 8
    D = H = W = 8

    x = jax.random.normal(kx, (N, C_in, D, H, W), dtype=jnp.float32)
    # Deterministic parameter init (synthetic, mimics Conv3d param shapes).
    fan_in = C_in * 4 * 4 * 4
    bound = 1.0 / np.sqrt(fan_in)
    weight = jax.random.uniform(kw, (C_out, C_in, 4, 4, 4),
                                minval=-bound, maxval=bound, dtype=jnp.float32)
    bias = jax.random.uniform(kb, (C_out,),
                              minval=-bound, maxval=bound, dtype=jnp.float32)

    conv_jit = jax.jit(conv_421_pallas)
    out = conv_jit(x, weight, bias)
    out = jax.block_until_ready(out)

    # Reference: XLA's native 3D convolution (same semantics as nn.Conv3d).
    ref = jax.lax.conv_general_dilated(
        x, weight, window_strides=(2, 2, 2),
        padding=((1, 1), (1, 1), (1, 1)),
        dimension_numbers=("NCDHW", "OIDHW", "NCDHW"))
    ref = ref + bias.reshape(1, -1, 1, 1, 1)

    assert out.shape == (N, C_out, D // 2, H // 2, W // 2), out.shape
    np.testing.assert_allclose(np.asarray(out), np.asarray(ref),
                               rtol=1e-4, atol=1e-4)
    print("KERNEL_OK")
</pallas_src>

<mosaic_0001>
module attributes {stable_mosaic.version = 11 : i64} {
  func.func @kernel(%arg0: i32, %arg1: memref<1x8x8x256xf32, #tpu.memory_space<vmem>>, %arg2: memref<8x8x64xf32, #tpu.memory_space<vmem>>, %arg3: memref<8x1xf32, #tpu.memory_space<vmem>>, %arg4: memref<1x8x128xf32, #tpu.memory_space<vmem>>) attributes {dimension_semantics = [#tpu.dimension_semantics<parallel>], iteration_bounds = array<i64: 2>, scalar_prefetch = 0 : i64, scratch_operands = 0 : i64, tpu.core_type = #tpu.core_type<tc>, window_params = [{transform_indices = @transform_0, window_bounds = array<i64: 1, 8, 8, 256>}, {pipeline_mode = #tpu.pipeline_mode<synchronous>, transform_indices = @transform_1, window_bounds = array<i64: 8, 8, 64>}, {pipeline_mode = #tpu.pipeline_mode<synchronous>, transform_indices = @transform_2, window_bounds = array<i64: 8, 1>}, {transform_indices = @transform_3, window_bounds = array<i64: 1, 8, 128>}]} {
    %c0 = arith.constant 0 : index
    %c0_0 = arith.constant 0 : index
    %c0_1 = arith.constant 0 : index
    %c0_2 = arith.constant 0 : index
    %0 = vector.load %arg1[%c0, %c0_0, %c0_1, %c0_2] : memref<1x8x8x256xf32, #tpu.memory_space<vmem>>, vector<1x1x8x128xf32>
    %1 = vector.shape_cast %0 : vector<1x1x8x128xf32> to vector<8x128xf32>
    %c0_3 = arith.constant 0 : index
    %c0_4 = arith.constant 0 : index
    %c0_5 = arith.constant 0 : index
    %c1 = arith.constant 1 : index
    %2 = vector.load %arg1[%c0_3, %c0_4, %c0_5, %c1] : memref<1x8x8x256xf32, #tpu.memory_space<vmem>>, vector<1x1x8x128xf32>
    %3 = vector.shape_cast %2 : vector<1x1x8x128xf32> to vector<8x128xf32>
    %c0_6 = arith.constant 0 : index
    %c0_7 = arith.constant 0 : index
    %c0_8 = arith.constant 0 : index
    %c5 = arith.constant 5 : index
    %4 = vector.load %arg1[%c0_6, %c0_7, %c0_8, %c5] : memref<1x8x8x256xf32, #tpu.memory_space<vmem>>, vector<1x1x8x128xf32>
    %5 = vector.shape_cast %4 : vector<1x1x8x128xf32> to vector<8x128xf32>
    %c0_9 = arith.constant 0 : index
    %c0_10 = arith.constant 0 : index
    %c0_11 = arith.constant 0 : index
    %c6 = arith.constant 6 : index
    %6 = vector.load %arg1[%c0_9, %c0_10, %c0_11, %c6] : memref<1x8x8x256xf32, #tpu.memory_space<vmem>>, vector<1x1x8x128xf32>
    %7 = vector.shape_cast %6 : vector<1x1x8x128xf32> to vector<8x128xf32>
    %c0_12 = arith.constant 0 : index
    %c0_13 = arith.constant 0 : index
    %c0_14 = arith.constant 0 : index
    %c25 = arith.constant 25 : index
    %8 = vector.load %arg1[%c0_12, %c0_13, %c0_14, %c25] : memref<1x8x8x256xf32, #tpu.memory_space<vmem>>, vector<1x1x8x128xf32>
    %9 = vector.shape_cast %8 : vector<1x1x8x128xf32> to vector<8x128xf32>
    %c0_15 = arith.constant 0 : index
    %c0_16 = arith.constant 0 : index
    %c0_17 = arith.constant 0 : index
    %c26 = arith.constant 26 : index
    %10 = vector.load %arg1[%c0_15, %c0_16, %c0_17, %c26] : memref<1x8x8x256xf32, #tpu.memory_space<vmem>>, vector<1x1x8x128xf32>
    %11 = vector.shape_cast %10 : vector<1x1x8x128xf32> to vector<8x128xf32>
    %c0_18 = arith.constant 0 : index
    %c0_19 = arith.constant 0 : index
    %c0_20 = arith.constant 0 : index
    %c30 = arith.constant 30 : index
    %12 = vector.load %arg1[%c0_18, %c0_19, %c0_20, %c30] : memref<1x8x8x256xf32, #tpu.memory_space<vmem>>, vector<1x1x8x128xf32>
    %13 = vector.shape_cast %12 : vector<1x1x8x128xf32> to vector<8x128xf32>
    %c0_21 = arith.constant 0 : index
    %c0_22 = arith.constant 0 : index
    %c0_23 = arith.constant 0 : index
    %c31 = arith.constant 31 : index
    %14 = vector.load %arg1[%c0_21, %c0_22, %c0_23, %c31] : memref<1x8x8x256xf32, #tpu.memory_space<vmem>>, vector<1x1x8x128xf32>
    %15 = vector.shape_cast %14 : vector<1x1x8x128xf32> to vector<8x128xf32>
    %16 = tpu.concatenate %1, %3, %5, %7, %9, %11, %13, %15 in 0 : vector<8x128xf32>, vector<8x128xf32>, vector<8x128xf32>, vector<8x128xf32>, vector<8x128xf32>, vector<8x128xf32>, vector<8x128xf32>, vector<8x128xf32> -> vector<64x128xf32>
    %c0_24 = arith.constant 0 : index
    %c0_25 = arith.constant 0 : index
    %c0_26 = arith.constant 0 : index
    %17 = vector.load %arg2[%c0_24, %c0_25, %c0_26] : memref<8x8x64xf32, #tpu.memory_space<vmem>>, vector<1x8x64xf32>
    %18 = vector.shape_cast %17 : vector<1x8x64xf32> to vector<8x64xf32>
    %cst = arith.constant dense<0.000000e+00> : vector<8x128xf32>
    %19 = tpu.matmul %18, %16, %cst {dimension_numbers = #tpu.dot_dimension_numbers<[1], [0], [0], [1], [0, 0, 1, 1], [], []>} : vector<8x64xf32>, vector<64x128xf32>, vector<8x128xf32> -> vector<8x128xf32>
    %c0_27 = arith.constant 0 : index
    %c1_28 = arith.constant 1 : index
    %c0_29 = arith.constant 0 : index
    %c0_30 = arith.constant 0 : index
    %20 = vector.load %arg1[%c0_27, %c1_28, %c0_29, %c0_30] : memref<1x8x8x256xf32, #tpu.memory_space<vmem>>, vector<1x1x8x128xf32>
    %21 = vector.shape_cast %20 : vector<1x1x8x128xf32> to vector<8x128xf32>
    %c0_31 = arith.constant 0 : index
    %c1_32 = arith.constant 1 : index
    %c0_33 = arith.constant 0 : index
    %c1_34 = arith.constant 1 : index
    %22 = vector.load %arg1[%c0_31, %c1_32, %c0_33, %c1_34] : memref<1x8x8x256xf32, #tpu.memory_space<vmem>>, vector<1x1x8x128xf32>
    %23 = vector.shape_cast %22 : vector<1x1x8x128xf32> to vector<8x128xf32>
    %c0_35 = arith.constant 0 : index
    %c1_36 = arith.constant 1 : index
    %c0_37 = arith.constant 0 : index
    %c5_38 = arith.constant 5 : index
    %24 = vector.load %arg1[%c0_35, %c1_36, %c0_37, %c5_38] : memref<1x8x8x256xf32, #tpu.memory_space<vmem>>, vector<1x1x8x128xf32>
    %25 = vector.shape_cast %24 : vector<1x1x8x128xf32> to vector<8x128xf32>
    %c0_39 = arith.constant 0 : index
    %c1_40 = arith.constant 1 : index
    %c0_41 = arith.constant 0 : index
    %c6_42 = arith.constant 6 : index
    %26 = vector.load %arg1[%c0_39, %c1_40, %c0_41, %c6_42] : memref<1x8x8x256xf32, #tpu.memory_space<vmem>>, vector<1x1x8x128xf32>
    %27 = vector.shape_cast %26 : vector<1x1x8x128xf32> to vector<8x128xf32>
    %c0_43 = arith.constant 0 : index
    %c1_44 = arith.constant 1 : index
    %c0_45 = arith.constant 0 : index
    %c25_46 = arith.constant 25 : index
    %28 = vector.load %arg1[%c0_43, %c1_44, %c0_45, %c25_46] : memref<1x8x8x256xf32, #tpu.memory_space<vmem>>, vector<1x1x8x128xf32>
    %29 = vector.shape_cast %28 : vector<1x1x8x128xf32> to vector<8x128xf32>
    %c0_47 = arith.constant 0 : index
    %c1_48 = arith.constant 1 : index
    %c0_49 = arith.constant 0 : index
    %c26_50 = arith.constant 26 : index
    %30 = vector.load %arg1[%c0_47, %c1_48, %c0_49, %c26_50] : memref<1x8x8x256xf32, #tpu.memory_space<vmem>>, vector<1x1x8x128xf32>
    %31 = vector.shape_cast %30 : vector<1x1x8x128xf32> to vector<8x128xf32>
    %c0_51 = arith.constant 0 : index
    %c1_52 = arith.constant 1 : index
    %c0_53 = arith.constant 0 : index
    %c30_54 = arith.constant 30 : index
    %32 = vector.load %arg1[%c0_51, %c1_52, %c0_53, %c30_54] : memref<1x8x8x256xf32, #tpu.memory_space<vmem>>, vector<1x1x8x128xf32>
    %33 = vector.shape_cast %32 : vector<1x1x8x128xf32> to vector<8x128xf32>
    %c0_55 = arith.constant 0 : index
    %c1_56 = arith.constant 1 : index
    %c0_57 = arith.constant 0 : index
    %c31_58 = arith.constant 31 : index
    %34 = vector.load %arg1[%c0_55, %c1_56, %c0_57, %c31_58] : memref<1x8x8x256xf32, #tpu.memory_space<vmem>>, vector<1x1x8x128xf32>
    %35 = vector.shape_cast %34 : vector<1x1x8x128xf32> to vector<8x128xf32>
    %36 = tpu.concatenate %21, %23, %25, %27, %29, %31, %33, %35 in 0 : vector<8x128xf32>, vector<8x128xf32>, vector<8x128xf32>, vector<8x128xf32>, vector<8x128xf32>, vector<8x128xf32>, vector<8x128xf32>, vector<8x128xf32> -> vector<64x128xf32>
    %c1_59 = arith.constant 1 : index
    %c0_60 = arith.constant 0 : index
    %c0_61 = arith.constant 0 : index
    %37 = vector.load %arg2[%c1_59, %c0_60, %c0_61] : memref<8x8x64xf32, #tpu.memory_space<vmem>>, vector<1x8x64xf32>
    %38 = vector.shape_cast %37 : vector<1x8x64xf32> to vector<8x64xf32>
    %cst_62 = arith.constant dense<0.000000e+00> : vector<8x128xf32>
    %39 = tpu.matmul %38, %36, %cst_62 {dimension_numbers = #tpu.dot_dimension_numbers<[1], [0], [0], [1], [0, 0, 1, 1], [], []>} : vector<8x64xf32>, vector<64x128xf32>, vector<8x128xf32> -> vector<8x128xf32>
    %40 = arith.addf %19, %39 : vector<8x128xf32>
    %c0_63 = arith.constant 0 : index
    %c2 = arith.constant 2 : index
    %c0_64 = arith.constant 0 : index
    %c0_65 = arith.constant 0 : index
    %41 = vector.load %arg1[%c0_63, %c2, %c0_64, %c0_65] : memref<1x8x8x256xf32, #tpu.memory_space<vmem>>, vector<1x1x8x128xf32>
    %42 = vector.shape_cast %41 : vector<1x1x8x128xf32> to vector<8x128xf32>
    %c0_66 = arith.constant 0 : index
    %c2_67 = arith.constant 2 : index
    %c0_68 = arith.constant 0 : index
    %c1_69 = arith.constant 1 : index
    %43 = vector.load %arg1[%c0_66, %c2_67, %c0_68, %c1_69] : memref<1x8x8x256xf32, #tpu.memory_space<vmem>>, vector<1x1x8x128xf32>
    %44 = vector.shape_cast %43 : vector<1x1x8x128xf32> to vector<8x128xf32>
    %c0_70 = arith.constant 0 : index
    %c2_71 = arith.constant 2 : index
    %c0_72 = arith.constant 0 : index
    %c5_73 = arith.constant 5 : index
    %45 = vector.load %arg1[%c0_70, %c2_71, %c0_72, %c5_73] : memref<1x8x8x256xf32, #tpu.memory_space<vmem>>, vector<1x1x8x128xf32>
    %46 = vector.shape_cast %45 : vector<1x1x8x128xf32> to vector<8x128xf32>
    %c0_74 = arith.constant 0 : index
    %c2_75 = arith.constant 2 : index
    %c0_76 = arith.constant 0 : index
    %c6_77 = arith.constant 6 : index
    %47 = vector.load %arg1[%c0_74, %c2_75, %c0_76, %c6_77] : memref<1x8x8x256xf32, #tpu.memory_space<vmem>>, vector<1x1x8x128xf32>
    %48 = vector.shape_cast %47 : vector<1x1x8x128xf32> to vector<8x128xf32>
    %c0_78 = arith.constant 0 : index
    %c2_79 = arith.constant 2 : index
    %c0_80 = arith.constant 0 : index
    %c25_81 = arith.constant 25 : index
    %49 = vector.load %arg1[%c0_78, %c2_79, %c0_80, %c25_81] : memref<1x8x8x256xf32, #tpu.memory_space<vmem>>, vector<1x1x8x128xf32>
    %50 = vector.shape_cast %49 : vector<1x1x8x128xf32> to vector<8x128xf32>
    %c0_82 = arith.constant 0 : index
    %c2_83 = arith.constant 2 : index
    %c0_84 = arith.constant 0 : index
    %c26_85 = arith.constant 26 : index
    %51 = vector.load %arg1[%c0_82, %c2_83, %c0_84, %c26_85] : memref<1x8x8x256xf32, #tpu.memory_space<vmem>>, vector<1x1x8x128xf32>
    %52 = vector.shape_cast %51 : vector<1x1x8x128xf32> to vector<8x128xf32>
    %c0_86 = arith.constant 0 : index
    %c2_87 = arith.constant 2 : index
    %c0_88 = arith.constant 0 : index
    %c30_89 = arith.constant 30 : index
    %53 = vector.load %arg1[%c0_86, %c2_87, %c0_88, %c30_89] : memref<1x8x8x256xf32, #tpu.memory_space<vmem>>, vector<1x1x8x128xf32>
    %54 = vector.shape_cast %53 : vector<1x1x8x128xf32> to vector<8x128xf32>
    %c0_90 = arith.constant 0 : index
    %c2_91 = arith.constant 2 : index
    %c0_92 = arith.constant 0 : index
    %c31_93 = arith.constant 31 : index
    %55 = vector.load %arg1[%c0_90, %c2_91, %c0_92, %c31_93] : memref<1x8x8x256xf32, #tpu.memory_space<vmem>>, vector<1x1x8x128xf32>
    %56 = vector.shape_cast %55 : vector<1x1x8x128xf32> to vector<8x128xf32>
    %57 = tpu.concatenate %42, %44, %46, %48, %50, %52, %54, %56 in 0 : vector<8x128xf32>, vector<8x128xf32>, vector<8x128xf32>, vector<8x128xf32>, vector<8x128xf32>, vector<8x128xf32>, vector<8x128xf32>, vector<8x128xf32> -> vector<64x128xf32>
    %c2_94 = arith.constant 2 : index
    %c0_95 = arith.constant 0 : index
    %c0_96 = arith.constant 0 : index
    %58 = vector.load %arg2[%c2_94, %c0_95, %c0_96] : memref<8x8x64xf32, #tpu.memory_space<vmem>>, vector<1x8x64xf32>
    %59 = vector.shape_cast %58 : vector<1x8x64xf32> to vector<8x64xf32>
    %cst_97 = arith.constant dense<0.000000e+00> : vector<8x128xf32>
    %60 = tpu.matmul %59, %57, %cst_97 {dimension_numbers = #tpu.dot_dimension_numbers<[1], [0], [0], [1], [0, 0, 1, 1], [], []>} : vector<8x64xf32>, vector<64x128xf32>, vector<8x128xf32> -> vector<8x128xf32>
    %61 = arith.addf %40, %60 : vector<8x128xf32>
    %c0_98 = arith.constant 0 : index
    %c3 = arith.constant 3 : index
    %c0_99 = arith.constant 0 : index
    %c0_100 = arith.constant 0 : index
    %62 = vector.load %arg1[%c0_98, %c3, %c0_99, %c0_100] : memref<1x8x8x256xf32, #tpu.memory_space<vmem>>, vector<1x1x8x128xf32>
    %63 = vector.shape_cast %62 : vector<1x1x8x128xf32> to vector<8x128xf32>
    %c0_101 = arith.constant 0 : index
    %c3_102 = arith.constant 3 : index
    %c0_103 = arith.constant 0 : index
    %c1_104 = arith.constant 1 : index
    %64 = vector.load %arg1[%c0_101, %c3_102, %c0_103, %c1_104] : memref<1x8x8x256xf32, #tpu.memory_space<vmem>>, vector<1x1x8x128xf32>
    %65 = vector.shape_cast %64 : vector<1x1x8x128xf32> to vector<8x128xf32>
    %c0_105 = arith.constant 0 : index
    %c3_106 = arith.constant 3 : index
    %c0_107 = arith.constant 0 : index
    %c5_108 = arith.constant 5 : index
    %66 = vector.load %arg1[%c0_105, %c3_106, %c0_107, %c5_108] : memref<1x8x8x256xf32, #tpu.memory_space<vmem>>, vector<1x1x8x128xf32>
    %67 = vector.shape_cast %66 : vector<1x1x8x128xf32> to vector<8x128xf32>
    %c0_109 = arith.constant 0 : index
    %c3_110 = arith.constant 3 : index
    %c0_111 = arith.constant 0 : index
    %c6_112 = arith.constant 6 : index
    %68 = vector.load %arg1[%c0_109, %c3_110, %c0_111, %c6_112] : memref<1x8x8x256xf32, #tpu.memory_space<vmem>>, vector<1x1x8x128xf32>
    %69 = vector.shape_cast %68 : vector<1x1x8x128xf32> to vector<8x128xf32>
    %c0_113 = arith.constant 0 : index
    %c3_114 = arith.constant 3 : index
    %c0_115 = arith.constant 0 : index
    %c25_116 = arith.constant 25 : index
    %70 = vector.load %arg1[%c0_113, %c3_114, %c0_115, %c25_116] : memref<1x8x8x256xf32, #tpu.memory_space<vmem>>, vector<1x1x8x128xf32>
    %71 = vector.shape_cast %70 : vector<1x1x8x128xf32> to vector<8x128xf32>
    %c0_117 = arith.constant 0 : index
    %c3_118 = arith.constant 3 : index
    %c0_119 = arith.constant 0 : index
    %c26_120 = arith.constant 26 : index
    %72 = vector.load %arg1[%c0_117, %c3_118, %c0_119, %c26_120] : memref<1x8x8x256xf32, #tpu.memory_space<vmem>>, vector<1x1x8x128xf32>
    %73 = vector.shape_cast %72 : vector<1x1x8x128xf32> to vector<8x128xf32>
    %c0_121 = arith.constant 0 : index
    %c3_122 = arith.constant 3 : index
    %c0_123 = arith.constant 0 : index
    %c30_124 = arith.constant 30 : index
    %74 = vector.load %arg1[%c0_121, %c3_122, %c0_123, %c30_124] : memref<1x8x8x256xf32, #tpu.memory_space<vmem>>, vector<1x1x8x128xf32>
    %75 = vector.shape_cast %74 : vector<1x1x8x128xf32> to vector<8x128xf32>
    %c0_125 = arith.constant 0 : index
    %c3_126 = arith.constant 3 : index
    %c0_127 = arith.constant 0 : index
    %c31_128 = arith.constant 31 : index
    %76 = vector.load %arg1[%c0_125, %c3_126, %c0_127, %c31_128] : memref<1x8x8x256xf32, #tpu.memory_space<vmem>>, vector<1x1x8x128xf32>
    %77 = vector.shape_cast %76 : vector<1x1x8x128xf32> to vector<8x128xf32>
    %78 = tpu.concatenate %63, %65, %67, %69, %71, %73, %75, %77 in 0 : vector<8x128xf32>, vector<8x128xf32>, vector<8x128xf32>, vector<8x128xf32>, vector<8x128xf32>, vector<8x128xf32>, vector<8x128xf32>, vector<8x128xf32> -> vector<64x128xf32>
    %c3_129 = arith.constant 3 : index
    %c0_130 = arith.constant 0 : index
    %c0_131 = arith.constant 0 : index
    %79 = vector.load %arg2[%c3_129, %c0_130, %c0_131] : memref<8x8x64xf32, #tpu.memory_space<vmem>>, vector<1x8x64xf32>
    %80 = vector.shape_cast %79 : vector<1x8x64xf32> to vector<8x64xf32>
    %cst_132 = arith.constant dense<0.000000e+00> : vector<8x128xf32>
    %81 = tpu.matmul %80, %78, %cst_132 {dimension_numbers = #tpu.dot_dimension_numbers<[1], [0], [0], [1], [0, 0, 1, 1], [], []>} : vector<8x64xf32>, vector<64x128xf32>, vector<8x128xf32> -> vector<8x128xf32>
    %82 = arith.addf %61, %81 : vector<8x128xf32>
    %c0_133 = arith.constant 0 : index
    %c4 = arith.constant 4 : index
    %c0_134 = arith.constant 0 : index
    %c0_135 = arith.constant 0 : index
    %83 = vector.load %arg1[%c0_133, %c4, %c0_134, %c0_135] : memref<1x8x8x256xf32, #tpu.memory_space<vmem>>, vector<1x1x8x128xf32>
    %84 = vector.shape_cast %83 : vector<1x1x8x128xf32> to vector<8x128xf32>
    %c0_136 = arith.constant 0 : index
    %c4_137 = arith.constant 4 : index
    %c0_138 = arith.constant 0 : index
    %c1_139 = arith.constant 1 : index
    %85 = vector.load %arg1[%c0_136, %c4_137, %c0_138, %c1_139] : memref<1x8x8x256xf32, #tpu.memory_space<vmem>>, vector<1x1x8x128xf32>
    %86 = vector.shape_cast %85 : vector<1x1x8x128xf32> to vector<8x128xf32>
    %c0_140 = arith.constant 0 : index
    %c4_141 = arith.constant 4 : index
    %c0_142 = arith.constant 0 : index
    %c5_143 = arith.constant 5 : index
    %87 = vector.load %arg1[%c0_140, %c4_141, %c0_142, %c5_143] : memref<1x8x8x256xf32, #tpu.memory_space<vmem>>, vector<1x1x8x128xf32>
    %88 = vector.shape_cast %87 : vector<1x1x8x128xf32> to vector<8x128xf32>
    %c0_144 = arith.constant 0 : index
    %c4_145 = arith.constant 4 : index
    %c0_146 = arith.constant 0 : index
    %c6_147 = arith.constant 6 : index
    %89 = vector.load %arg1[%c0_144, %c4_145, %c0_146, %c6_147] : memref<1x8x8x256xf32, #tpu.memory_space<vmem>>, vector<1x1x8x128xf32>
    %90 = vector.shape_cast %89 : vector<1x1x8x128xf32> to vector<8x128xf32>
    %c0_148 = arith.constant 0 : index
    %c4_149 = arith.constant 4 : index
    %c0_150 = arith.constant 0 : index
    %c25_151 = arith.constant 25 : index
    %91 = vector.load %arg1[%c0_148, %c4_149, %c0_150, %c25_151] : memref<1x8x8x256xf32, #tpu.memory_space<vmem>>, vector<1x1x8x128xf32>
    %92 = vector.shape_cast %91 : vector<1x1x8x128xf32> to vector<8x128xf32>
    %c0_152 = arith.constant 0 : index
    %c4_153 = arith.constant 4 : index
    %c0_154 = arith.constant 0 : index
    %c26_155 = arith.constant 26 : index
    %93 = vector.load %arg1[%c0_152, %c4_153, %c0_154, %c26_155] : memref<1x8x8x256xf32, #tpu.memory_space<vmem>>, vector<1x1x8x128xf32>
    %94 = vector.shape_cast %93 : vector<1x1x8x128xf32> to vector<8x128xf32>
    %c0_156 = arith.constant 0 : index
    %c4_157 = arith.constant 4 : index
    %c0_158 = arith.constant 0 : index
    %c30_159 = arith.constant 30 : index
    %95 = vector.load %arg1[%c0_156, %c4_157, %c0_158, %c30_159] : memref<1x8x8x256xf32, #tpu.memory_space<vmem>>, vector<1x1x8x128xf32>
    %96 = vector.shape_cast %95 : vector<1x1x8x128xf32> to vector<8x128xf32>
    %c0_160 = arith.constant 0 : index
    %c4_161 = arith.constant 4 : index
    %c0_162 = arith.constant 0 : index
    %c31_163 = arith.constant 31 : index
    %97 = vector.load %arg1[%c0_160, %c4_161, %c0_162, %c31_163] : memref<1x8x8x256xf32, #tpu.memory_space<vmem>>, vector<1x1x8x128xf32>
    %98 = vector.shape_cast %97 : vector<1x1x8x128xf32> to vector<8x128xf32>
    %99 = tpu.concatenate %84, %86, %88, %90, %92, %94, %96, %98 in 0 : vector<8x128xf32>, vector<8x128xf32>, vector<8x128xf32>, vector<8x128xf32>, vector<8x128xf32>, vector<8x128xf32>, vector<8x128xf32>, vector<8x128xf32> -> vector<64x128xf32>
    %c4_164 = arith.constant 4 : index
    %c0_165 = arith.constant 0 : index
    %c0_166 = arith.constant 0 : index
    %100 = vector.load %arg2[%c4_164, %c0_165, %c0_166] : memref<8x8x64xf32, #tpu.memory_space<vmem>>, vector<1x8x64xf32>
    %101 = vector.shape_cast %100 : vector<1x8x64xf32> to vector<8x64xf32>
    %cst_167 = arith.constant dense<0.000000e+00> : vector<8x128xf32>
    %102 = tpu.matmul %101, %99, %cst_167 {dimension_numbers = #tpu.dot_dimension_numbers<[1], [0], [0], [1], [0, 0, 1, 1], [], []>} : vector<8x64xf32>, vector<64x128xf32>, vector<8x128xf32> -> vector<8x128xf32>
    %103 = arith.addf %82, %102 : vector<8x128xf32>
    %c0_168 = arith.constant 0 : index
    %c5_169 = arith.constant 5 : index
    %c0_170 = arith.constant 0 : index
    %c0_171 = arith.constant 0 : index
    %104 = vector.load %arg1[%c0_168, %c5_169, %c0_170, %c0_171] : memref<1x8x8x256xf32, #tpu.memory_space<vmem>>, vector<1x1x8x128xf32>
    %105 = vector.shape_cast %104 : vector<1x1x8x128xf32> to vector<8x128xf32>
    %c0_172 = arith.constant 0 : index
    %c5_173 = arith.constant 5 : index
    %c0_174 = arith.constant 0 : index
    %c1_175 = arith.constant 1 : index
    %106 = vector.load %arg1[%c0_172, %c5_173, %c0_174, %c1_175] : memref<1x8x8x256xf32, #tpu.memory_space<vmem>>, vector<1x1x8x128xf32>
    %107 = vector.shape_cast %106 : vector<1x1x8x128xf32> to vector<8x128xf32>
    %c0_176 = arith.constant 0 : index
    %c5_177 = arith.constant 5 : index
    %c0_178 = arith.constant 0 : index
    %c5_179 = arith.constant 5 : index
    %108 = vector.load %arg1[%c0_176, %c5_177, %c0_178, %c5_179] : memref<1x8x8x256xf32, #tpu.memory_space<vmem>>, vector<1x1x8x128xf32>
    %109 = vector.shape_cast %108 : vector<1x1x8x128xf32> to vector<8x128xf32>
    %c0_180 = arith.constant 0 : index
    %c5_181 = arith.constant 5 : index
    %c0_182 = arith.constant 0 : index
    %c6_183 = arith.constant 6 : index
    %110 = vector.load %arg1[%c0_180, %c5_181, %c0_182, %c6_183] : memref<1x8x8x256xf32, #tpu.memory_space<vmem>>, vector<1x1x8x128xf32>
    %111 = vector.shape_cast %110 : vector<1x1x8x128xf32> to vector<8x128xf32>
    %c0_184 = arith.constant 0 : index
    %c5_185 = arith.constant 5 : index
    %c0_186 = arith.constant 0 : index
    %c25_187 = arith.constant 25 : index
    %112 = vector.load %arg1[%c0_184, %c5_185, %c0_186, %c25_187] : memref<1x8x8x256xf32, #tpu.memory_space<vmem>>, vector<1x1x8x128xf32>
    %113 = vector.shape_cast %112 : vector<1x1x8x128xf32> to vector<8x128xf32>
    %c0_188 = arith.constant 0 : index
    %c5_189 = arith.constant 5 : index
    %c0_190 = arith.constant 0 : index
    %c26_191 = arith.constant 26 : index
    %114 = vector.load %arg1[%c0_188, %c5_189, %c0_190, %c26_191] : memref<1x8x8x256xf32, #tpu.memory_space<vmem>>, vector<1x1x8x128xf32>
    %115 = vector.shape_cast %114 : vector<1x1x8x128xf32> to vector<8x128xf32>
    %c0_192 = arith.constant 0 : index
    %c5_193 = arith.constant 5 : index
    %c0_194 = arith.constant 0 : index
    %c30_195 = arith.constant 30 : index
    %116 = vector.load %arg1[%c0_192, %c5_193, %c0_194, %c30_195] : memref<1x8x8x256xf32, #tpu.memory_space<vmem>>, vector<1x1x8x128xf32>
    %117 = vector.shape_cast %116 : vector<1x1x8x128xf32> to vector<8x128xf32>
    %c0_196 = arith.constant 0 : index
    %c5_197 = arith.constant 5 : index
    %c0_198 = arith.constant 0 : index
    %c31_199 = arith.constant 31 : index
    %118 = vector.load %arg1[%c0_196, %c5_197, %c0_198, %c31_199] : memref<1x8x8x256xf32, #tpu.memory_space<vmem>>, vector<1x1x8x128xf32>
    %119 = vector.shape_cast %118 : vector<1x1x8x128xf32> to vector<8x128xf32>
    %120 = tpu.concatenate %105, %107, %109, %111, %113, %115, %117, %119 in 0 : vector<8x128xf32>, vector<8x128xf32>, vector<8x128xf32>, vector<8x128xf32>, vector<8x128xf32>, vector<8x128xf32>, vector<8x128xf32>, vector<8x128xf32> -> vector<64x128xf32>
    %c5_200 = arith.constant 5 : index
    %c0_201 = arith.constant 0 : index
    %c0_202 = arith.constant 0 : index
    %121 = vector.load %arg2[%c5_200, %c0_201, %c0_202] : memref<8x8x64xf32, #tpu.memory_space<vmem>>, vector<1x8x64xf32>
    %122 = vector.shape_cast %121 : vector<1x8x64xf32> to vector<8x64xf32>
    %cst_203 = arith.constant dense<0.000000e+00> : vector<8x128xf32>
    %123 = tpu.matmul %122, %120, %cst_203 {dimension_numbers = #tpu.dot_dimension_numbers<[1], [0], [0], [1], [0, 0, 1, 1], [], []>} : vector<8x64xf32>, vector<64x128xf32>, vector<8x128xf32> -> vector<8x128xf32>
    %124 = arith.addf %103, %123 : vector<8x128xf32>
    %c0_204 = arith.constant 0 : index
    %c6_205 = arith.constant 6 : index
    %c0_206 = arith.constant 0 : index
    %c0_207 = arith.constant 0 : index
    %125 = vector.load %arg1[%c0_204, %c6_205, %c0_206, %c0_207] : memref<1x8x8x256xf32, #tpu.memory_space<vmem>>, vector<1x1x8x128xf32>
    %126 = vector.shape_cast %125 : vector<1x1x8x128xf32> to vector<8x128xf32>
    %c0_208 = arith.constant 0 : index
    %c6_209 = arith.constant 6 : index
    %c0_210 = arith.constant 0 : index
    %c1_211 = arith.constant 1 : index
    %127 = vector.load %arg1[%c0_208, %c6_209, %c0_210, %c1_211] : memref<1x8x8x256xf32, #tpu.memory_space<vmem>>, vector<1x1x8x128xf32>
    %128 = vector.shape_cast %127 : vector<1x1x8x128xf32> to vector<8x128xf32>
    %c0_212 = arith.constant 0 : index
    %c6_213 = arith.constant 6 : index
    %c0_214 = arith.constant 0 : index
    %c5_215 = arith.constant 5 : index
    %129 = vector.load %arg1[%c0_212, %c6_213, %c0_214, %c5_215] : memref<1x8x8x256xf32, #tpu.memory_space<vmem>>, vector<1x1x8x128xf32>
    %130 = vector.shape_cast %129 : vector<1x1x8x128xf32> to vector<8x128xf32>
    %c0_216 = arith.constant 0 : index
    %c6_217 = arith.constant 6 : index
    %c0_218 = arith.constant 0 : index
    %c6_219 = arith.constant 6 : index
    %131 = vector.load %arg1[%c0_216, %c6_217, %c0_218, %c6_219] : memref<1x8x8x256xf32, #tpu.memory_space<vmem>>, vector<1x1x8x128xf32>
    %132 = vector.shape_cast %131 : vector<1x1x8x128xf32> to vector<8x128xf32>
    %c0_220 = arith.constant 0 : index
    %c6_221 = arith.constant 6 : index
    %c0_222 = arith.constant 0 : index
    %c25_223 = arith.constant 25 : index
    %133 = vector.load %arg1[%c0_220, %c6_221, %c0_222, %c25_223] : memref<1x8x8x256xf32, #tpu.memory_space<vmem>>, vector<1x1x8x128xf32>
    %134 = vector.shape_cast %133 : vector<1x1x8x128xf32> to vector<8x128xf32>
    %c0_224 = arith.constant 0 : index
    %c6_225 = arith.constant 6 : index
    %c0_226 = arith.constant 0 : index
    %c26_227 = arith.constant 26 : index
    %135 = vector.load %arg1[%c0_224, %c6_225, %c0_226, %c26_227] : memref<1x8x8x256xf32, #tpu.memory_space<vmem>>, vector<1x1x8x128xf32>
    %136 = vector.shape_cast %135 : vector<1x1x8x128xf32> to vector<8x128xf32>
    %c0_228 = arith.constant 0 : index
    %c6_229 = arith.constant 6 : index
    %c0_230 = arith.constant 0 : index
    %c30_231 = arith.constant 30 : index
    %137 = vector.load %arg1[%c0_228, %c6_229, %c0_230, %c30_231] : memref<1x8x8x256xf32, #tpu.memory_space<vmem>>, vector<1x1x8x128xf32>
    %138 = vector.shape_cast %137 : vector<1x1x8x128xf32> to vector<8x128xf32>
    %c0_232 = arith.constant 0 : index
    %c6_233 = arith.constant 6 : index
    %c0_234 = arith.constant 0 : index
    %c31_235 = arith.constant 31 : index
    %139 = vector.load %arg1[%c0_232, %c6_233, %c0_234, %c31_235] : memref<1x8x8x256xf32, #tpu.memory_space<vmem>>, vector<1x1x8x128xf32>
    %140 = vector.shape_cast %139 : vector<1x1x8x128xf32> to vector<8x128xf32>
    %141 = tpu.concatenate %126, %128, %130, %132, %134, %136, %138, %140 in 0 : vector<8x128xf32>, vector<8x128xf32>, vector<8x128xf32>, vector<8x128xf32>, vector<8x128xf32>, vector<8x128xf32>, vector<8x128xf32>, vector<8x128xf32> -> vector<64x128xf32>
    %c6_236 = arith.constant 6 : index
    %c0_237 = arith.constant 0 : index
    %c0_238 = arith.constant 0 : index
    %142 = vector.load %arg2[%c6_236, %c0_237, %c0_238] : memref<8x8x64xf32, #tpu.memory_space<vmem>>, vector<1x8x64xf32>
    %143 = vector.shape_cast %142 : vector<1x8x64xf32> to vector<8x64xf32>
    %cst_239 = arith.constant dense<0.000000e+00> : vector<8x128xf32>
    %144 = tpu.matmul %143, %141, %cst_239 {dimension_numbers = #tpu.dot_dimension_numbers<[1], [0], [0], [1], [0, 0, 1, 1], [], []>} : vector<8x64xf32>, vector<64x128xf32>, vector<8x128xf32> -> vector<8x128xf32>
    %145 = arith.addf %124, %144 : vector<8x128xf32>
    %c0_240 = arith.constant 0 : index
    %c7 = arith.constant 7 : index
    %c0_241 = arith.constant 0 : index
    %c0_242 = arith.constant 0 : index
    %146 = vector.load %arg1[%c0_240, %c7, %c0_241, %c0_242] : memref<1x8x8x256xf32, #tpu.memory_space<vmem>>, vector<1x1x8x128xf32>
    %147 = vector.shape_cast %146 : vector<1x1x8x128xf32> to vector<8x128xf32>
    %c0_243 = arith.constant 0 : index
    %c7_244 = arith.constant 7 : index
    %c0_245 = arith.constant 0 : index
    %c1_246 = arith.constant 1 : index
    %148 = vector.load %arg1[%c0_243, %c7_244, %c0_245, %c1_246] : memref<1x8x8x256xf32, #tpu.memory_space<vmem>>, vector<1x1x8x128xf32>
    %149 = vector.shape_cast %148 : vector<1x1x8x128xf32> to vector<8x128xf32>
    %c0_247 = arith.constant 0 : index
    %c7_248 = arith.constant 7 : index
    %c0_249 = arith.constant 0 : index
    %c5_250 = arith.constant 5 : index
    %150 = vector.load %arg1[%c0_247, %c7_248, %c0_249, %c5_250] : memref<1x8x8x256xf32, #tpu.memory_space<vmem>>, vector<1x1x8x128xf32>
    %151 = vector.shape_cast %150 : vector<1x1x8x128xf32> to vector<8x128xf32>
    %c0_251 = arith.constant 0 : index
    %c7_252 = arith.constant 7 : index
    %c0_253 = arith.constant 0 : index
    %c6_254 = arith.constant 6 : index
    %152 = vector.load %arg1[%c0_251, %c7_252, %c0_253, %c6_254] : memref<1x8x8x256xf32, #tpu.memory_space<vmem>>, vector<1x1x8x128xf32>
    %153 = vector.shape_cast %152 : vector<1x1x8x128xf32> to vector<8x128xf32>
    %c0_255 = arith.constant 0 : index
    %c7_256 = arith.constant 7 : index
    %c0_257 = arith.constant 0 : index
    %c25_258 = arith.constant 25 : index
    %154 = vector.load %arg1[%c0_255, %c7_256, %c0_257, %c25_258] : memref<1x8x8x256xf32, #tpu.memory_space<vmem>>, vector<1x1x8x128xf32>
    %155 = vector.shape_cast %154 : vector<1x1x8x128xf32> to vector<8x128xf32>
    %c0_259 = arith.constant 0 : index
    %c7_260 = arith.constant 7 : index
    %c0_261 = arith.constant 0 : index
    %c26_262 = arith.constant 26 : index
    %156 = vector.load %arg1[%c0_259, %c7_260, %c0_261, %c26_262] : memref<1x8x8x256xf32, #tpu.memory_space<vmem>>, vector<1x1x8x128xf32>
    %157 = vector.shape_cast %156 : vector<1x1x8x128xf32> to vector<8x128xf32>
    %c0_263 = arith.constant 0 : index
    %c7_264 = arith.constant 7 : index
    %c0_265 = arith.constant 0 : index
    %c30_266 = arith.constant 30 : index
    %158 = vector.load %arg1[%c0_263, %c7_264, %c0_265, %c30_266] : memref<1x8x8x256xf32, #tpu.memory_space<vmem>>, vector<1x1x8x128xf32>
    %159 = vector.shape_cast %158 : vector<1x1x8x128xf32> to vector<8x128xf32>
    %c0_267 = arith.constant 0 : index
    %c7_268 = arith.constant 7 : index
    %c0_269 = arith.constant 0 : index
    %c31_270 = arith.constant 31 : index
    %160 = vector.load %arg1[%c0_267, %c7_268, %c0_269, %c31_270] : memref<1x8x8x256xf32, #tpu.memory_space<vmem>>, vector<1x1x8x128xf32>
    %161 = vector.shape_cast %160 : vector<1x1x8x128xf32> to vector<8x128xf32>
    %162 = tpu.concatenate %147, %149, %151, %153, %155, %157, %159, %161 in 0 : vector<8x128xf32>, vector<8x128xf32>, vector<8x128xf32>, vector<8x128xf32>, vector<8x128xf32>, vector<8x128xf32>, vector<8x128xf32>, vector<8x128xf32> -> vector<64x128xf32>
    %c7_271 = arith.constant 7 : index
    %c0_272 = arith.constant 0 : index
    %c0_273 = arith.constant 0 : index
    %163 = vector.load %arg2[%c7_271, %c0_272, %c0_273] : memref<8x8x64xf32, #tpu.memory_space<vmem>>, vector<1x8x64xf32>
    %164 = vector.shape_cast %163 : vector<1x8x64xf32> to vector<8x64xf32>
    %cst_274 = arith.constant dense<0.000000e+00> : vector<8x128xf32>
    %165 = tpu.matmul %164, %162, %cst_274 {dimension_numbers = #tpu.dot_dimension_numbers<[1], [0], [0], [1], [0, 0, 1, 1], [], []>} : vector<8x64xf32>, vector<64x128xf32>, vector<8x128xf32> -> vector<8x128xf32>
    %166 = arith.addf %145, %165 : vector<8x128xf32>
    %c0_275 = arith.constant 0 : index
    %c0_276 = arith.constant 0 : index
    %167 = vector.load %arg3[%c0_275, %c0_276] : memref<8x1xf32, #tpu.memory_space<vmem>>, vector<8x1xf32>
    %168 = vector.broadcast %167 : vector<8x1xf32> to vector<8x128xf32>
    %169 = arith.addf %166, %168 : vector<8x128xf32>
    %c0_277 = arith.constant 0 : index
    %c0_278 = arith.constant 0 : index
    %c0_279 = arith.constant 0 : index
    %170 = vector.load %arg4[%c0_277, %c0_278, %c0_279] : memref<1x8x128xf32, #tpu.memory_space<vmem>>, vector<1x8x128xf32>
    %171 = vector.shape_cast %170 : vector<1x8x128xf32> to vector<8x128xf32>
    %172 = vector.shape_cast %169 : vector<8x128xf32> to vector<1x8x128xf32>
    tpu.vector_store %arg4[%c0_277, %c0_278, %c0_279], %172 {strides = array<i32>} : memref<1x8x128xf32, #tpu.memory_space<vmem>>, vector<1x8x128xf32>,
    return
  }
  func.func @transform_0(%arg0: i32) -> (i32, i32, i32, i32) {
    %c0_i32 = arith.constant 0 : i32
    %c0_i32_0 = arith.constant 0 : i32
    %c0_i32_1 = arith.constant 0 : i32
    %c0_i32_2 = arith.constant 0 : i32
    return %arg0, %c0_i32, %c0_i32_0, %c0_i32_1 : i32, i32, i32, i32
  }
  func.func @transform_1(%arg0: i32) -> (i32, i32, i32) {
    %c0_i32 = arith.constant 0 : i32
    %c0_i32_0 = arith.constant 0 : i32
    %c0_i32_1 = arith.constant 0 : i32
    %c0_i32_2 = arith.constant 0 : i32
    return %c0_i32, %c0_i32_0, %c0_i32_1 : i32, i32, i32
  }
  func.func @transform_2(%arg0: i32) -> (i32, i32) {
    %c0_i32 = arith.constant 0 : i32
    %c0_i32_0 = arith.constant 0 : i32
    %c0_i32_1 = arith.constant 0 : i32
    return %c0_i32, %c0_i32_0 : i32, i32
  }
  func.func @transform_3(%arg0: i32) -> (i32, i32, i32) {
    %c0_i32 = arith.constant 0 : i32
    %c0_i32_0 = arith.constant 0 : i32
    %c0_i32_1 = arith.constant 0 : i32
    return %arg0, %c0_i32, %c0_i32_0 : i32, i32, i32
  }
}

</mosaic_0001>

<bundles_post_ra>
// kernel: conv_421_pallas.1
= control target key start
LH: loop header
LB: loop body
LE: loop exit
PB: predicated region body
PF: predicated region fallthrough
CT: control target
= control target key end

     0   :  { %s1917_s12 = smov 0   ;;  %s2183_s0 = inlined_call_operand.vmem [shape: f32[2,8,8,256], index: 0, kind: input, shape index: {}]   ;;  %s2184_s1 = inlined_call_operand.vmem [shape: f32[8,8,64], index: 1, kind: input, shape index: {}]   ;;  %s2185_s2 = inlined_call_operand.vmem [shape: f32[8,1], index: 2, kind: input, shape index: {}]   ;;  %s2186_s3 = inlined_call_operand.vmem [shape: f32[2,8,128], index: 3, kind: output, shape index: {}]  }
   0x1 LB: > { %s1218_s13 = sadd.s32 4294967295, %s1884_s12   ;;  %p1222_p0 = scmp.ge.s32.totalorder %s1884_s12, 1  ;;  %s1884_s12 = sphi %s1917_s12, %s13_s12  }
   0x2   : > { %p137_p1 = scmp.lt.s32.totalorder %s1884_s12, 3 }
   0x4   : > { %p138_p2 = pnand %p1222_p0, %p137_p1 }
   0x5   : > { %p160_p3 = scmp.lt.s32.totalorder (!%p138_p2), %s1218_s13, 1  ;;  %v1886_v0 = vmov (!%p138_p2), 0.0|0.0   ;;  %s1887_s18 = smov (!%p138_p2), 123   ;;  %vm1892_vm0 = vmmov (!%p138_p2), 0   ;;  %v1893_v7 = vmov (!%p138_p2), 0.0   ;;  %v1896_v26 = vmov (!%p138_p2), 0  }
   0x6   : > { %141 = sbr.rel (%p138_p2) target bundleno = 467 (0x1d3), region = 32  ;;  %1482 = vmatprep.subr.bf16.mxu0 (!%p138_p2), %v1886_v0  ;;  %1494 = vmatprep.subr.bf16.mxu1 (!%p138_p2), %v1886_v0  ;;  %s1888_s19 = smov (!%p138_p2), 127   ;;  %v1157_v27 = vld [vmem:[%s2185_s2] sm:$0xff] (!%p138_p2)  ;;  %vm177_vm1 = vcmask (!%p138_p2), 1039360   ;;  %vm184_vm2 = vcmask (!%p138_p2), 1006592   ;;  %vm191_vm3 = vcmask (!%p138_p2), 998400  }
   0x7   : > { %s1889_s20 = smov (!%p138_p2), 122   ;;  %s1890_s21 = smov (!%p138_p2), 102   ;;  %1346 = vmatprep.mubr.msk.f32.mxu0 (!%p138_p2), %vm1892_vm0, %v1893_v7  ;;  %1365 = vmatprep.mubr.msk.f32.mxu1 (!%p138_p2), %vm1892_vm0, %v1893_v7  ;;  %vm198_vm4 = vcmask (!%p138_p2), 842752   ;;  %vm205_vm5 = vcmask (!%p138_p2), 834560   ;;  %vm212_vm6 = vcmask (!%p138_p2), 801792   ;;  %vm219_vm7 = vcmask (!%p138_p2), 793600  }
   0x8   : > { %s1891_s22 = smov (!%p138_p2), 103   ;;  %s1894_s23 = smov (!%p138_p2), 97   ;;  %1877 = vset.pattern.permute.xlu0 (!%p138_p2), %v1896_v26  ;;  %vm272_vm8 = vcmask (!%p138_p2), 523264  }
   0x9   : > { %s1895_s24 = smov (!%p138_p2), 98  }
   0xd   : > { %s2188_s13 = smov (!%p160_p3, %s1218_s13), 1 }
   0xe   : > { %s1257_s14 = sshll.u32 %s2188_s13, 7 }
   0xf   : > { %s1933_s17 = scalar_lea.vmem %s2183_s0, %s1257_s14 }
  0x10   : > { %v1936_v1 = vld [vmem:[%s1933_s17 + $0x10] sm:$0xff]  ;;  %v1227_v2 = vld [vmem:[%s1933_s17 + $0x18] sm:$0xff]  ;;  %v1940_v3 = vld [vmem:[%s1933_s17] sm:$0xff] }
  0x11   : > { %v1607_v4 = vpack.i.bf16 %v1227_v2, %v1936_v1  ;;  %v170_v5 = vld [vmem:[%s1933_s17 + $0x8] sm:$0xff]  ;;  %v1962_v8 = vld [vmem:[%s1933_s17 + $0x30] sm:$0xff]  ;;  %v1236_v9 = vld [vmem:[%s1933_s17 + $0x38] sm:$0xff] }
  0x12   : > { %v1602_v6 = vpack.i.bf16 %v170_v5, %v1940_v3  ;;  %v1966_v10 = vld [vmem:[%s1933_s17 + $0x20] sm:$0xff]  ;;  %v1232_v11 = vld [vmem:[%s1933_s17 + $0x28] sm:$0xff]  ;;  %v1672_v12 = vpack.i.bf16 %v1236_v9, %v1962_v8  ;;  %v1986_v14 = vld [vmem:[%s1933_s17 + $0x50] sm:$0xff] }
  0x13   : > { %1608 = vrot.lane.b32.xlu1 %v1607_v4, %s1887_s18  ;;  %1598 = vrot.lane.b32.xlu0 %v1607_v4, %s1888_s19  ;;  %v1667_v13 = vpack.i.bf16 %v1232_v11, %v1966_v10  ;;  %v1244_v15 = vld [vmem:[%s1933_s17 + $0x58] sm:$0xff]  ;;  %v1990_v16 = vld [vmem:[%s1933_s17 + $0x40] sm:$0xff] }
  0x14   : > { %v1240_v17 = vld [vmem:[%s1933_s17 + $0x48] sm:$0xff]  ;;  %v1742_v18 = vpack.i.bf16 %v1244_v15, %v1986_v14  ;;  %v2010_v20 = vld [vmem:[%s1933_s17 + $0x70] sm:$0xff]  ;;  %v1252_v21 = vld [vmem:[%s1933_s17 + $0x78] sm:$0xff] }
  0x15   : > { %v1737_v19 = vpack.i.bf16 %v1240_v17, %v1990_v16  ;;  %v2014_v22 = vld [vmem:[%s1933_s17 + $0x60] sm:$0xff]  ;;  %v1248_v23 = vld [vmem:[%s1933_s17 + $0x68] sm:$0xff]  ;;  %v1812_v24 = vpack.i.bf16 %v1252_v21, %v2010_v20 }
  0x16   : > { %v1807_v25 = vpack.i.bf16 %v1248_v23, %v2014_v22 }
  0x17   : > { %1613 = vrot.lane.b32.xlu1 %v1607_v4, %s1889_s20  ;;  %1603 = vrot.lane.b32.xlu0 %v1602_v6, %s1888_s19 }
  0x1b   : > { %1623 = vrot.lane.b32.xlu1 %v1602_v6, %s1889_s20  ;;  %1618 = vrot.lane.b32.xlu0 %v1602_v6, %s1887_s18 }
  0x1f   : > { %1633 = vrot.lane.b32.xlu1 %v1607_v4, %s1890_s21  ;;  %1628 = vrot.lane.b32.xlu0 %v1607_v4, %s1891_s22 }
  0x23   : > { %1643 = vrot.lane.b32.xlu1 %v1602_v6, %s1890_s21  ;;  %1638 = vrot.lane.b32.xlu0 %v1602_v6, %s1891_s22 }
  0x27   : > { %1653 = vrot.lane.b32.xlu1 %v1607_v4, %s1894_s23  ;;  %1648 = vrot.lane.b32.xlu0 %v1607_v4, %s1895_s24 }
  0x2b   : > { %1663 = vrot.lane.b32.xlu1 %v1602_v6, %s1894_s23  ;;  %1658 = vrot.lane.b32.xlu0 %v1602_v6, %s1895_s24 }
  0x2f   : > { %1673 = vrot.lane.b32.xlu1 %v1672_v12, %s1888_s19  ;;  %1668 = vrot.lane.b32.xlu0 %v1667_v13, %s1888_s19 }
  0x33   : > { %1683 = vrot.lane.b32.xlu1 %v1667_v13, %s1889_s20  ;;  %1678 = vrot.lane.b32.xlu0 %v1667_v13, %s1887_s18 }
  0x37   : > { %1693 = vrot.lane.b32.xlu1 %v1672_v12, %s1889_s20  ;;  %1688 = vrot.lane.b32.xlu0 %v1672_v12, %s1887_s18 }
  0x3b   : > { %1703 = vrot.lane.b32.xlu1 %v1667_v13, %s1890_s21  ;;  %1698 = vrot.lane.b32.xlu0 %v1667_v13, %s1891_s22 }
  0x3f   : > { %1713 = vrot.lane.b32.xlu1 %v1672_v12, %s1890_s21  ;;  %1708 = vrot.lane.b32.xlu0 %v1672_v12, %s1891_s22 }
  0x43   : > { %1723 = vrot.lane.b32.xlu1 %v1667_v13, %s1894_s23  ;;  %1718 = vrot.lane.b32.xlu0 %v1667_v13, %s1895_s24 }
  0x47   : > { %1733 = vrot.lane.b32.xlu1 %v1672_v12, %s1894_s23  ;;  %1728 = vrot.lane.b32.xlu0 %v1672_v12, %s1895_s24 }
  0x4b   : > { %1743 = vrot.lane.b32.xlu1 %v1742_v18, %s1888_s19  ;;  %1738 = vrot.lane.b32.xlu0 %v1737_v19, %s1888_s19 }
  0x4f   : > { %1753 = vrot.lane.b32.xlu1 %v1737_v19, %s1889_s20  ;;  %1748 = vrot.lane.b32.xlu0 %v1737_v19, %s1887_s18 }
  0x53   : > { %1763 = vrot.lane.b32.xlu1 %v1742_v18, %s1889_s20  ;;  %1758 = vrot.lane.b32.xlu0 %v1742_v18, %s1887_s18 }
  0x57   : > { %1773 = vrot.lane.b32.xlu1 %v1737_v19, %s1890_s21  ;;  %1768 = vrot.lane.b32.xlu0 %v1737_v19, %s1891_s22 }
  0x5b   : > { %1783 = vrot.lane.b32.xlu1 %v1742_v18, %s1890_s21  ;;  %1778 = vrot.lane.b32.xlu0 %v1742_v18, %s1891_s22 }
  0x5f   : > { %1793 = vrot.lane.b32.xlu1 %v1737_v19, %s1894_s23  ;;  %1788 = vrot.lane.b32.xlu0 %v1737_v19, %s1895_s24 }
  0x63   : > { %1803 = vrot.lane.b32.xlu1 %v1742_v18, %s1894_s23  ;;  %1798 = vrot.lane.b32.xlu0 %v1742_v18, %s1895_s24 }
  0x67   : > { %1813 = vrot.lane.b32.xlu1 %v1812_v24, %s1888_s19  ;;  %1808 = vrot.lane.b32.xlu0 %v1807_v25, %s1888_s19 }
  0x6b   : > { %1823 = vrot.lane.b32.xlu1 %v1807_v25, %s1889_s20  ;;  %1818 = vrot.lane.b32.xlu0 %v1807_v25, %s1887_s18 }
  0x6f   : > { %1833 = vrot.lane.b32.xlu1 %v1812_v24, %s1889_s20  ;;  %1828 = vrot.lane.b32.xlu0 %v1812_v24, %s1887_s18  ;;  %s1225_s18 = sshll.u32 %s2188_s13, 3 }
  0x73   : > { %1843 = vrot.lane.b32.xlu1 %v1807_v25, %s1890_s21  ;;  %1838 = vrot.lane.b32.xlu0 %v1807_v25, %s1891_s22 }
  0x77   : > { %1853 = vrot.lane.b32.xlu1 %v1812_v24, %s1890_s21  ;;  %1848 = vrot.lane.b32.xlu0 %v1812_v24, %s1891_s22  ;;  %s168_s21 = scalar_lea.vmem %s2186_s3, %s1225_s18 }
  0x7b   : > { %1863 = vrot.lane.b32.xlu1 %v1807_v25, %s1894_s23  ;;  %1858 = vrot.lane.b32.xlu0 %v1807_v25, %s1895_s24 }
  0x7f   : > { %1873 = vrot.lane.b32.xlu1 %v1812_v24, %s1894_s23  ;;  %1868 = vrot.lane.b32.xlu0 %v1812_v24, %s1895_s24 }
  0x83   : > { %1160 = vperm.xlu0 %1877, %v1157_v27  }
  0x85   : > { %v1609_v28 = vpop.permute.xlu1 %1608  ;;  %v1599_v29 = vpop.permute.xlu0 %1598 }
  0x86   : > { %v1601_v30 = vunpack.i.h.bf16 %v1599_v29  ;;  %v1600_v31 = vunpack.i.l.bf16 %v1599_v29  ;;  %v1611_v32 = vunpack.i.h.bf16 %v1609_v28  ;;  %v1610_v33 = vunpack.i.l.bf16 %v1609_v28 }
  0x88   : > { %v232_v34 = vsel %vm177_vm1, %v1600_v31, %v1601_v30  ;;  %v238_v42 = vsel %vm184_vm2, %v1610_v33, %v1611_v32  ;;  %v1228_v33 = vld [vmem:[%s2184_s1 + $0x8] sm:$0xff] }
  0x89   : > { %v1614_v35 = vpop.permute.xlu1 %1613  ;;  %v1604_v36 = vpop.permute.xlu0 %1603  ;;  %v1483_v37 = vpack.c.bf16 %v232_v34, %v1936_v1 }
  0x8a   : > { %v1616_v38 = vunpack.i.h.bf16 %v1614_v35  ;;  %v1615_v39 = vunpack.i.l.bf16 %v1614_v35  ;;  %v1606_v40 = vunpack.i.h.bf16 %v1604_v36  ;;  %v1605_v41 = vunpack.i.l.bf16 %v1604_v36 }
  0x8b   : > { %1484 = vmatpush3.bf16.msra.mxu0 %v1483_v37 }
  0x8c   : > { %1485 = vmatprep.subr.bf16.mxu0 %v1886_v0  ;;  %v244_v43 = vsel %vm191_vm3, %v1615_v39, %v1616_v38  ;;  %v178_v44 = vsel %vm177_vm1, %v1605_v41, %v1606_v40 }
  0x8d   : > { %v1624_v45 = vpop.permute.xlu1 %1623  ;;  %v1619_v46 = vpop.permute.xlu0 %1618  ;;  %v1486_v47 = vpack.c.bf16 %v244_v43, %v238_v42  ;;  %v1495_v48 = vpack.c.bf16 %v178_v44, %v1940_v3  ;;  %v222_v43 = vld [vmem:[%s2184_s1] sm:$0xff] }
  0x8e   : > { %v1626_v49 = vunpack.i.h.bf16 %v1624_v45  ;;  %v1625_v50 = vunpack.i.l.bf16 %v1624_v45  ;;  %v1621_v51 = vunpack.i.h.bf16 %v1619_v46  ;;  %v1620_v52 = vunpack.i.l.bf16 %v1619_v46 }
  0x8f   : > { %1487 = vmatpush3.bf16.msra.mxu0 %v1486_v47  ;;  %1496 = vmatpush3.bf16.msra.mxu1 %v1495_v48 }
  0x90   : > { %1497 = vmatprep.subr.bf16.mxu1 %v1886_v0  ;;  %v185_v53 = vsel %vm184_vm2, %v1620_v52, %v1621_v51  ;;  %v192_v54 = vsel %vm191_vm3, %v1625_v50, %v1626_v49  ;;  %1488 = vmatprep.subr.bf16.mxu0 %v1886_v0 }
  0x91   : > { %v1634_v55 = vpop.permute.xlu1 %1633  ;;  %v1629_v56 = vpop.permute.xlu0 %1628  ;;  %v1498_v57 = vpack.c.bf16 %v192_v54, %v185_v53 }
  0x92   : > { %v1636_v58 = vunpack.i.h.bf16 %v1634_v55  ;;  %v1635_v59 = vunpack.i.l.bf16 %v1634_v55  ;;  %v1631_v60 = vunpack.i.h.bf16 %v1629_v56  ;;  %v1630_v61 = vunpack.i.l.bf16 %v1629_v56 }
  0x93   : > { %1499 = vmatpush3.bf16.msra.mxu1 %v1498_v57 }
  0x94   : > { %v250_v62 = vsel %vm198_vm4, %v1630_v61, %v1631_v60  ;;  %v256_v63 = vsel %vm205_vm5, %v1635_v59, %v1636_v58  ;;  %1500 = vmatprep.subr.bf16.mxu1 %v1886_v0 }
  0x95   : > { %v1644_v1 = vpop.permute.xlu1 %1643  ;;  %v1639_v2 = vpop.permute.xlu0 %1638  ;;  %v1489_v3 = vpack.c.bf16 %v256_v63, %v250_v62 }
  0x96   : > { %v1646_v4 = vunpack.i.h.bf16 %v1644_v1  ;;  %v1645_v5 = vunpack.i.l.bf16 %v1644_v1  ;;  %v1641_v6 = vunpack.i.h.bf16 %v1639_v2  ;;  %v1640_v9 = vunpack.i.l.bf16 %v1639_v2 }
  0x97   : > { %1490 = vmatpush3.bf16.msra.mxu0 %v1489_v3 }
  0x98   : > { %v199_v11 = vsel %vm198_vm4, %v1640_v9, %v1641_v6  ;;  %v206_v12 = vsel %vm205_vm5, %v1645_v5, %v1646_v4  ;;  %1491 = vmatprep.subr.bf16.mxu0 %v1886_v0 }
  0x99   : > { %v1654_v13 = vpop.permute.xlu1 %1653  ;;  %v1649_v15 = vpop.permute.xlu0 %1648  ;;  %v1501_v17 = vpack.c.bf16 %v206_v12, %v199_v11 }
  0x9a   : > { %v1656_v18 = vunpack.i.h.bf16 %v1654_v13  ;;  %v1655_v19 = vunpack.i.l.bf16 %v1654_v13  ;;  %v1651_v21 = vunpack.i.h.bf16 %v1649_v15  ;;  %v1650_v23 = vunpack.i.l.bf16 %v1649_v15 }
  0x9b   : > { %1502 = vmatpush3.bf16.msra.mxu1 %v1501_v17 }
  0x9c   : > { %v262_v24 = vsel %vm212_vm6, %v1650_v23, %v1651_v21  ;;  %v268_v25 = vsel %vm219_vm7, %v1655_v19, %v1656_v18  ;;  %1503 = vmatprep.subr.bf16.mxu1 %v1886_v0 }
  0x9d   : > { %v1664_v26 = vpop.permute.xlu1 %1663  ;;  %v1659_v27 = vpop.permute.xlu0 %1658  ;;  %v1492_v28 = vpack.c.bf16 %v268_v25, %v262_v24 }
  0x9e   : > { %v1666_v29 = vunpack.i.h.bf16 %v1664_v26  ;;  %v1665_v30 = vunpack.i.l.bf16 %v1664_v26  ;;  %v1661_v31 = vunpack.i.h.bf16 %v1659_v27  ;;  %v1660_v32 = vunpack.i.l.bf16 %v1659_v27 }
  0x9f   : > { %1493 = vmatpush3.bf16.msra.mxu0 %v1492_v28 }
  0xa0   : > { %v213_v34 = vsel %vm212_vm6, %v1660_v32, %v1661_v31  ;;  %v220_v35 = vsel %vm219_vm7, %v1665_v30, %v1666_v29  ;;  %1506 = vmatprep.subr.bf16.mxu0 %v1886_v0 }
  0xa1   : > { %v1674_v36 = vpop.permute.xlu1 %1673  ;;  %v1669_v37 = vpop.permute.xlu0 %1668  ;;  %v1504_v38 = vpack.c.bf16 %v220_v35, %v213_v34 }
  0xa2   : > { %v1676_v39 = vunpack.i.h.bf16 %v1674_v36  ;;  %v1675_v40 = vunpack.i.l.bf16 %v1674_v36  ;;  %v1671_v41 = vunpack.i.h.bf16 %v1669_v37  ;;  %v1670_v42 = vunpack.i.l.bf16 %v1669_v37  ;;  %1347 = vmatmul.mubr.msk.f32.vlgmr.msra.gmra.mrb[0].mxu0 %vm272_vm8, %v1228_v33 }
  0xa3   : > { %1505 = vmatpush3.bf16.msra.mxu1 %v1504_v38  ;;  %1384 = vmatprep.mubr.msk.f32.mxu0 %vm1892_vm0, %v1893_v7 }
  0xa4   : > { %v551_v44 = vsel %vm177_vm1, %v1675_v40, %v1676_v39  ;;  %v428_v45 = vsel %vm177_vm1, %v1670_v42, %v1671_v41  ;;  %1518 = vmatprep.subr.bf16.mxu1 %v1886_v0  ;;  %v1233_v41 = vld [vmem:[%s2184_s1 + $0x10] sm:$0xff] }
  0xa5   : > { %v1519_v46 = vpack.c.bf16 %v551_v44, %v1962_v8  ;;  %v1507_v47 = vpack.c.bf16 %v428_v45, %v1966_v10  ;;  %v1684_v48 = vpop.permute.xlu1 %1683  ;;  %v1679_v49 = vpop.permute.xlu0 %1678 }
  0xa6   : > { %v1686_v50 = vunpack.i.h.bf16 %v1684_v48  ;;  %v1685_v51 = vunpack.i.l.bf16 %v1684_v48  ;;  %v1681_v52 = vunpack.i.h.bf16 %v1679_v49  ;;  %v1680_v53 = vunpack.i.l.bf16 %v1679_v49  ;;  %1366 = vmatmul.mubr.msk.f32.vlgmr.msra.gmra.mrb[0].mxu1 %vm272_vm8, %v222_v43 }
  0xa7   : > { %1508 = vmatpush3.bf16.msra.mxu0 %v1507_v47  ;;  %1520 = vmatpush3.bf16.msra.mxu1 %v1519_v46 }
  0xa8   : > { %v440_v54 = vsel %vm191_vm3, %v1685_v51, %v1686_v50  ;;  %v434_v55 = vsel %vm184_vm2, %v1680_v53, %v1681_v52  ;;  %1509 = vmatprep.subr.bf16.mxu0 %v1886_v0  ;;  %1521 = vmatprep.subr.bf16.mxu1 %v1886_v0  ;;  %v1237_v51 = vld [vmem:[%s2184_s1 + $0x18] sm:$0xff] }
  0xa9   : > { %v1510_v8 = vpack.c.bf16 %v440_v54, %v434_v55  ;;  %v1694_v10 = vpop.permute.xlu1 %1693  ;;  %v1689_v56 = vpop.permute.xlu0 %1688  ;;  %1403 = vmatprep.mubr.msk.f32.mxu1 %vm1892_vm0, %v1893_v7 }
  0xaa   : > { %v1696_v57 = vunpack.i.h.bf16 %v1694_v10  ;;  %v1695_v58 = vunpack.i.l.bf16 %v1694_v10  ;;  %v1691_v59 = vunpack.i.h.bf16 %v1689_v56  ;;  %v1690_v60 = vunpack.i.l.bf16 %v1689_v56 }
  0xab   : > { %1511 = vmatpush3.bf16.msra.mxu0 %v1510_v8 }
  0xac   : > { %v563_v61 = vsel %vm191_vm3, %v1695_v58, %v1696_v57  ;;  %v557_v62 = vsel %vm184_vm2, %v1690_v60, %v1691_v59  ;;  %1512 = vmatprep.subr.bf16.mxu0 %v1886_v0 }
  0xad   : > { %v1522_v63 = vpack.c.bf16 %v563_v61, %v557_v62  ;;  %v1704_v1 = vpop.permute.xlu1 %1703  ;;  %v1699_v2 = vpop.permute.xlu0 %1698 }
  0xae   : > { %v1706_v3 = vunpack.i.h.bf16 %v1704_v1  ;;  %v1705_v4 = vunpack.i.l.bf16 %v1704_v1  ;;  %v1701_v5 = vunpack.i.h.bf16 %v1699_v2  ;;  %v1700_v6 = vunpack.i.l.bf16 %v1699_v2 }
  0xaf   : > { %1523 = vmatpush3.bf16.msra.mxu1 %v1522_v63 }
  0xb0   : > { %v452_v9 = vsel %vm205_vm5, %v1705_v4, %v1706_v3  ;;  %v446_v11 = vsel %vm198_vm4, %v1700_v6, %v1701_v5  ;;  %1524 = vmatprep.subr.bf16.mxu1 %v1886_v0 }
  0xb1   : > { %v1513_v12 = vpack.c.bf16 %v452_v9, %v446_v11  ;;  %v1714_v13 = vpop.permute.xlu1 %1713  ;;  %v1709_v15 = vpop.permute.xlu0 %1708 }
  0xb2   : > { %v1716_v17 = vunpack.i.h.bf16 %v1714_v13  ;;  %v1715_v18 = vunpack.i.l.bf16 %v1714_v13  ;;  %v1711_v19 = vunpack.i.h.bf16 %v1709_v15  ;;  %v1710_v21 = vunpack.i.l.bf16 %v1709_v15 }
  0xb3   : > { %1514 = vmatpush3.bf16.msra.mxu0 %v1513_v12 }
  0xb4   : > { %v575_v23 = vsel %vm205_vm5, %v1715_v18, %v1716_v17  ;;  %v569_v24 = vsel %vm198_vm4, %v1710_v21, %v1711_v19  ;;  %1515 = vmatprep.subr.bf16.mxu0 %v1886_v0 }
  0xb5   : > { %v1525_v25 = vpack.c.bf16 %v575_v23, %v569_v24  ;;  %v1724_v26 = vpop.permute.xlu1 %1723  ;;  %v1719_v27 = vpop.permute.xlu0 %1718 }
  0xb6   : > { %v1726_v28 = vunpack.i.h.bf16 %v1724_v26  ;;  %v1725_v29 = vunpack.i.l.bf16 %v1724_v26  ;;  %v1721_v30 = vunpack.i.h.bf16 %v1719_v27  ;;  %v1720_v31 = vunpack.i.l.bf16 %v1719_v27 }
  0xb7   : > { %1526 = vmatpush3.bf16.msra.mxu1 %v1525_v25 }
  0xb8   : > { %v464_v32 = vsel %vm219_vm7, %v1725_v29, %v1726_v28  ;;  %v458_v33 = vsel %vm212_vm6, %v1720_v31, %v1721_v30  ;;  %1527 = vmatprep.subr.bf16.mxu1 %v1886_v0 }
  0xb9   : > { %v1516_v34 = vpack.c.bf16 %v464_v32, %v458_v33  ;;  %v1734_v35 = vpop.permute.xlu1 %1733  ;;  %v1729_v36 = vpop.permute.xlu0 %1728 }
  0xba   : > { %v1736_v37 = vunpack.i.h.bf16 %v1734_v35  ;;  %v1735_v38 = vunpack.i.l.bf16 %v1734_v35  ;;  %v1731_v39 = vunpack.i.h.bf16 %v1729_v36  ;;  %v1730_v40 = vunpack.i.l.bf16 %v1729_v36 }
  0xbb   : > { %1517 = vmatpush3.bf16.msra.mxu0 %v1516_v34 }
  0xbc   : > { %v587_v42 = vsel %vm219_vm7, %v1735_v38, %v1736_v37  ;;  %v581_v43 = vsel %vm212_vm6, %v1730_v40, %v1731_v39  ;;  %1530 = vmatprep.subr.bf16.mxu0 %v1886_v0 }
  0xbd   : > { %v1528_v44 = vpack.c.bf16 %v587_v42, %v581_v43  ;;  %v1744_v45 = vpop.permute.xlu1 %1743  ;;  %v1739_v46 = vpop.permute.xlu0 %1738 }
  0xbe   : > { %v1746_v47 = vunpack.i.h.bf16 %v1744_v45  ;;  %v1745_v48 = vunpack.i.l.bf16 %v1744_v45  ;;  %v1741_v49 = vunpack.i.h.bf16 %v1739_v46  ;;  %v1740_v50 = vunpack.i.l.bf16 %v1739_v46  ;;  %1385 = vmatmul.mubr.msk.f32.vlgmr.msra.gmra.mrb[2].mxu0 %vm272_vm8, %v1233_v41 }
  0xbf   : > { %1529 = vmatpush3.bf16.msra.mxu1 %v1528_v44  ;;  %1422 = vmatprep.mubr.msk.f32.mxu0 %vm1892_vm0, %v1893_v7 }
  0xc0   : > { %v797_v52 = vsel %vm177_vm1, %v1745_v48, %v1746_v47  ;;  %v674_v53 = vsel %vm177_vm1, %v1740_v50, %v1741_v49  ;;  %1542 = vmatprep.subr.bf16.mxu1 %v1886_v0  ;;  %v1241_v47 = vld [vmem:[%s2184_s1 + $0x20] sm:$0xff] }
  0xc1   : > { %v1543_v54 = vpack.c.bf16 %v797_v52, %v1986_v14  ;;  %v1531_v55 = vpack.c.bf16 %v674_v53, %v1990_v16  ;;  %v1754_v8 = vpop.permute.xlu1 %1753  ;;  %v1749_v10 = vpop.permute.xlu0 %1748 }
  0xc2   : > { %v1756_v56 = vunpack.i.h.bf16 %v1754_v8  ;;  %v1755_v57 = vunpack.i.l.bf16 %v1754_v8  ;;  %v1751_v58 = vunpack.i.h.bf16 %v1749_v10  ;;  %v1750_v59 = vunpack.i.l.bf16 %v1749_v10  ;;  %1404 = vmatmul.mubr.msk.f32.vlgmr.msra.gmra.mrb[2].mxu1 %vm272_vm8, %v1237_v51  ;;  %v1245_v10 = vld [vmem:[%s2184_s1 + $0x28] sm:$0xff] }
  0xc3   : > { %1532 = vmatpush3.bf16.msra.mxu0 %v1531_v55  ;;  %1544 = vmatpush3.bf16.msra.mxu1 %v1543_v54 }
  0xc4   : > { %v686_v60 = vsel %vm191_vm3, %v1755_v57, %v1756_v56  ;;  %v680_v61 = vsel %vm184_vm2, %v1750_v59, %v1751_v58  ;;  %1533 = vmatprep.subr.bf16.mxu0 %v1886_v0  ;;  %1545 = vmatprep.subr.bf16.mxu1 %v1886_v0 }
  0xc5   : > { %v1534_v14 = vpack.c.bf16 %v686_v60, %v680_v61  ;;  %v1764_v16 = vpop.permute.xlu1 %1763  ;;  %v1759_v62 = vpop.permute.xlu0 %1758  ;;  %1441 = vmatprep.mubr.msk.f32.mxu1 %vm1892_vm0, %v1893_v7 }
  0xc6   : > { %v1766_v63 = vunpack.i.h.bf16 %v1764_v16  ;;  %v1765_v1 = vunpack.i.l.bf16 %v1764_v16  ;;  %v1761_v2 = vunpack.i.h.bf16 %v1759_v62  ;;  %v1760_v3 = vunpack.i.l.bf16 %v1759_v62 }
  0xc7   : > { %1535 = vmatpush3.bf16.msra.mxu0 %v1534_v14 }
  0xc8   : > { %v809_v4 = vsel %vm191_vm3, %v1765_v1, %v1766_v63  ;;  %v803_v5 = vsel %vm184_vm2, %v1760_v3, %v1761_v2  ;;  %1536 = vmatprep.subr.bf16.mxu0 %v1886_v0 }
  0xc9   : > { %v1546_v6 = vpack.c.bf16 %v809_v4, %v803_v5  ;;  %v1774_v9 = vpop.permute.xlu1 %1773  ;;  %v1769_v11 = vpop.permute.xlu0 %1768 }
  0xca   : > { %v1776_v12 = vunpack.i.h.bf16 %v1774_v9  ;;  %v1775_v13 = vunpack.i.l.bf16 %v1774_v9  ;;  %v1771_v15 = vunpack.i.h.bf16 %v1769_v11  ;;  %v1770_v17 = vunpack.i.l.bf16 %v1769_v11 }
  0xcb   : > { %1547 = vmatpush3.bf16.msra.mxu1 %v1546_v6 }
  0xcc   : > { %v698_v18 = vsel %vm205_vm5, %v1775_v13, %v1776_v12  ;;  %v692_v19 = vsel %vm198_vm4, %v1770_v17, %v1771_v15  ;;  %1548 = vmatprep.subr.bf16.mxu1 %v1886_v0 }
  0xcd   : > { %v1537_v21 = vpack.c.bf16 %v698_v18, %v692_v19  ;;  %v1784_v23 = vpop.permute.xlu1 %1783  ;;  %v1779_v24 = vpop.permute.xlu0 %1778 }
  0xce   : > { %v1786_v25 = vunpack.i.h.bf16 %v1784_v23  ;;  %v1785_v26 = vunpack.i.l.bf16 %v1784_v23  ;;  %v1781_v27 = vunpack.i.h.bf16 %v1779_v24  ;;  %v1780_v28 = vunpack.i.l.bf16 %v1779_v24 }
  0xcf   : > { %1538 = vmatpush3.bf16.msra.mxu0 %v1537_v21 }
  0xd0   : > { %v821_v29 = vsel %vm205_vm5, %v1785_v26, %v1786_v25  ;;  %v815_v30 = vsel %vm198_vm4, %v1780_v28, %v1781_v27  ;;  %1539 = vmatprep.subr.bf16.mxu0 %v1886_v0 }
  0xd1   : > { %v1549_v31 = vpack.c.bf16 %v821_v29, %v815_v30  ;;  %v1794_v32 = vpop.permute.xlu1 %1793  ;;  %v1789_v33 = vpop.permute.xlu0 %1788 }
  0xd2   : > { %v1796_v34 = vunpack.i.h.bf16 %v1794_v32  ;;  %v1795_v35 = vunpack.i.l.bf16 %v1794_v32  ;;  %v1791_v36 = vunpack.i.h.bf16 %v1789_v33  ;;  %v1790_v37 = vunpack.i.l.bf16 %v1789_v33 }
  0xd3   : > { %1550 = vmatpush3.bf16.msra.mxu1 %v1549_v31 }
  0xd4   : > { %v710_v38 = vsel %vm219_vm7, %v1795_v35, %v1796_v34  ;;  %v704_v39 = vsel %vm212_vm6, %v1790_v37, %v1791_v36  ;;  %1551 = vmatprep.subr.bf16.mxu1 %v1886_v0 }
  0xd5   : > { %v1540_v40 = vpack.c.bf16 %v710_v38, %v704_v39  ;;  %v1804_v41 = vpop.permute.xlu1 %1803  ;;  %v1799_v42 = vpop.permute.xlu0 %1798 }
  0xd6   : > { %v1806_v43 = vunpack.i.h.bf16 %v1804_v41  ;;  %v1805_v44 = vunpack.i.l.bf16 %v1804_v41  ;;  %v1801_v45 = vunpack.i.h.bf16 %v1799_v42  ;;  %v1800_v46 = vunpack.i.l.bf16 %v1799_v42 }
  0xd7   : > { %1541 = vmatpush3.bf16.msra.mxu0 %v1540_v40 }
  0xd8   : > { %v833_v48 = vsel %vm219_vm7, %v1805_v44, %v1806_v43  ;;  %v827_v49 = vsel %vm212_vm6, %v1800_v46, %v1801_v45  ;;  %1554 = vmatprep.subr.bf16.mxu0 %v1886_v0 }
  0xd9   : > { %v1552_v50 = vpack.c.bf16 %v833_v48, %v827_v49  ;;  %v1814_v51 = vpop.permute.xlu1 %1813  ;;  %v1809_v52 = vpop.permute.xlu0 %1808 }
  0xda   : > { %v1816_v53 = vunpack.i.h.bf16 %v1814_v51  ;;  %v1815_v54 = vunpack.i.l.bf16 %v1814_v51  ;;  %v1811_v55 = vunpack.i.h.bf16 %v1809_v52  ;;  %v1810_v8 = vunpack.i.l.bf16 %v1809_v52  ;;  %1423 = vmatmul.mubr.msk.f32.vlgmr.msra.gmra.mrb[4].mxu0 %vm272_vm8, %v1241_v47 }
  0xdb   : > { %1553 = vmatpush3.bf16.msra.mxu1 %v1552_v50  ;;  %1460 = vmatprep.mubr.msk.f32.mxu0 %vm1892_vm0, %v1893_v7  ;;  %v1249_v50 = vld [vmem:[%s2184_s1 + $0x30] sm:$0xff] }
  0xdc   : > { %v1043_v56 = vsel %vm177_vm1, %v1815_v54, %v1816_v53  ;;  %v920_v57 = vsel %vm177_vm1, %v1810_v8, %v1811_v55  ;;  %1566 = vmatprep.subr.bf16.mxu1 %v1886_v0 }
  0xdd   : > { %v1567_v58 = vpack.c.bf16 %v1043_v56, %v2010_v20  ;;  %v1555_v59 = vpack.c.bf16 %v920_v57, %v2014_v22  ;;  %v1824_v60 = vpop.permute.xlu1 %1823  ;;  %v1819_v61 = vpop.permute.xlu0 %1818 }
  0xde   : > { %v1826_v14 = vunpack.i.h.bf16 %v1824_v60  ;;  %v1825_v16 = vunpack.i.l.bf16 %v1824_v60  ;;  %v1821_v62 = vunpack.i.h.bf16 %v1819_v61  ;;  %v1820_v63 = vunpack.i.l.bf16 %v1819_v61  ;;  %1442 = vmatmul.mubr.msk.f32.vlgmr.msra.gmra.mrb[4].mxu1 %vm272_vm8, %v1245_v10 }
  0xdf   : > { %1556 = vmatpush3.bf16.msra.mxu0 %v1555_v59  ;;  %1568 = vmatpush3.bf16.msra.mxu1 %v1567_v58 }
  0xe0   : > { %v932_v1 = vsel %vm191_vm3, %v1825_v16, %v1826_v14  ;;  %v926_v2 = vsel %vm184_vm2, %v1820_v63, %v1821_v62  ;;  %1557 = vmatprep.subr.bf16.mxu0 %v1886_v0  ;;  %1569 = vmatprep.subr.bf16.mxu1 %v1886_v0 }
  0xe1   : > { %v1558_v20 = vpack.c.bf16 %v932_v1, %v926_v2  ;;  %v1834_v22 = vpop.permute.xlu1 %1833  ;;  %v1829_v3 = vpop.permute.xlu0 %1828  ;;  %1479 = vmatprep.mubr.msk.f32.mxu1 %vm1892_vm0, %v1893_v7 }
  0xe2   : > { %v1836_v4 = vunpack.i.h.bf16 %v1834_v22  ;;  %v1835_v5 = vunpack.i.l.bf16 %v1834_v22  ;;  %v1831_v6 = vunpack.i.h.bf16 %v1829_v3  ;;  %v1830_v9 = vunpack.i.l.bf16 %v1829_v3 }
  0xe3   : > { %1559 = vmatpush3.bf16.msra.mxu0 %v1558_v20 }
  0xe4   : > { %v1055_v11 = vsel %vm191_vm3, %v1835_v5, %v1836_v4  ;;  %v1049_v12 = vsel %vm184_vm2, %v1830_v9, %v1831_v6  ;;  %1560 = vmatprep.subr.bf16.mxu0 %v1886_v0 }
  0xe5   : > { %v1570_v13 = vpack.c.bf16 %v1055_v11, %v1049_v12  ;;  %v1844_v15 = vpop.permute.xlu1 %1843  ;;  %v1839_v17 = vpop.permute.xlu0 %1838 }
  0xe6   : > { %v1846_v18 = vunpack.i.h.bf16 %v1844_v15  ;;  %v1845_v19 = vunpack.i.l.bf16 %v1844_v15  ;;  %v1841_v21 = vunpack.i.h.bf16 %v1839_v17  ;;  %v1840_v23 = vunpack.i.l.bf16 %v1839_v17 }
  0xe7   : > { %1571 = vmatpush3.bf16.msra.mxu1 %v1570_v13 }
  0xe8   : > { %v944_v7 = vsel %vm205_vm5, %v1845_v19, %v1846_v18  ;;  %v938_v24 = vsel %vm198_vm4, %v1840_v23, %v1841_v21  ;;  %1572 = vmatprep.subr.bf16.mxu1 %v1886_v0 }
  0xe9   : > { %v1561_v25 = vpack.c.bf16 %v944_v7, %v938_v24  ;;  %v1854_v26 = vpop.permute.xlu1 %1853  ;;  %v1849_v27 = vpop.permute.xlu0 %1848 }
  0xea   : > { %v1856_v28 = vunpack.i.h.bf16 %v1854_v26  ;;  %v1855_v29 = vunpack.i.l.bf16 %v1854_v26  ;;  %v1851_v30 = vunpack.i.h.bf16 %v1849_v27  ;;  %v1850_v31 = vunpack.i.l.bf16 %v1849_v27 }
  0xeb   : > { %1562 = vmatpush3.bf16.msra.mxu0 %v1561_v25 }
  0xec   : > { %v1067_v32 = vsel %vm205_vm5, %v1855_v29, %v1856_v28  ;;  %v1061_v33 = vsel %vm198_vm4, %v1850_v31, %v1851_v30  ;;  %1563 = vmatprep.subr.bf16.mxu0 %v1886_v0 }
  0xed   : > { %v1573_v34 = vpack.c.bf16 %v1067_v32, %v1061_v33  ;;  %v1864_v35 = vpop.permute.xlu1 %1863  ;;  %v1859_v36 = vpop.permute.xlu0 %1858 }
  0xee   : > { %v1866_v37 = vunpack.i.h.bf16 %v1864_v35  ;;  %v1865_v38 = vunpack.i.l.bf16 %v1864_v35  ;;  %v1861_v39 = vunpack.i.h.bf16 %v1859_v36  ;;  %v1860_v40 = vunpack.i.l.bf16 %v1859_v36 }
  0xef   : > { %1574 = vmatpush3.bf16.msra.mxu1 %v1573_v34 }
  0xf0   : > { %v956_v41 = vsel %vm219_vm7, %v1865_v38, %v1866_v37  ;;  %v950_v42 = vsel %vm212_vm6, %v1860_v40, %v1861_v39  ;;  %1575 = vmatprep.subr.bf16.mxu1 %v1886_v0  ;;  %v1253_v0 = vld [vmem:[%s2184_s1 + $0x38] sm:$0xff] }
  0xf1   : > { %v1564_v43 = vpack.c.bf16 %v956_v41, %v950_v42  ;;  %v1874_v44 = vpop.permute.xlu1 %1873  ;;  %v1869_v45 = vpop.permute.xlu0 %1868 }
  0xf2   : > { %v1876_v46 = vunpack.i.h.bf16 %v1874_v44  ;;  %v1875_v47 = vunpack.i.l.bf16 %v1874_v44  ;;  %v1871_v48 = vunpack.i.h.bf16 %v1869_v45  ;;  %v1870_v49 = vunpack.i.l.bf16 %v1869_v45 }
  0xf3   : > { %1565 = vmatpush3.bf16.msra.mxu0 %v1564_v43 }
  0xf4   : > { %v1079_v51 = vsel %vm219_vm7, %v1875_v47, %v1876_v46  ;;  %v1073_v52 = vsel %vm212_vm6, %v1870_v49, %v1871_v48 }
  0xf5   : > { %v1576_v53 = vpack.c.bf16 %v1079_v51, %v1073_v52 }
  0xf6   : > { %1461 = vmatmul.mubr.msk.f32.vlgmr.msra.gmra.mrb[6].mxu0 %vm272_vm8, %v1249_v50 }
  0xf7   : > { %1577 = vmatpush3.bf16.msra.mxu1 %v1576_v53 }
  0xfa   : > { %1480 = vmatmul.mubr.msk.f32.vlgmr.msra.gmra.mrb[6].mxu1 %vm272_vm8, %v1253_v0 }
 0x102   : > { %v1161_v6 = vpop.permute.xlu0 %1160 }
 0x175   : > { %v342_v54 = vpop.f32.mrb[0].mxu0 }
 0x176   : > { %v1348_v55 = vpop.f32.mrb[1].mxu0 }
 0x179   : > { %v415_v8 = vpop.f32.mrb[0].mxu1 }
 0x17a   : > { %v416_v10 = vadd.f32 %v415_v8, %v342_v54  ;;  %v1367_v56 = vpop.f32.mrb[1].mxu1 }
 0x191   : > { %v537_v57 = vpop.f32.mrb[2].mxu0 }
 0x192   : > { %v541_v58 = vadd.f32 %v537_v57, %v416_v10  ;;  %v1386_v59 = vpop.f32.mrb[3].mxu0 }
 0x195   : > { %v660_v60 = vpop.f32.mrb[2].mxu1 }
 0x196   : > { %v664_v61 = vadd.f32 %v660_v60, %v541_v58  ;;  %v1405_v14 = vpop.f32.mrb[3].mxu1 }
 0x1ad   : > { %v783_v16 = vpop.f32.mrb[4].mxu0 }
 0x1ae   : > { %v787_v62 = vadd.f32 %v783_v16, %v664_v61  ;;  %v1424_v63 = vpop.f32.mrb[5].mxu0 }
 0x1b1   : > { %v906_v1 = vpop.f32.mrb[4].mxu1 }
 0x1b2   : > { %v910_v2 = vadd.f32 %v906_v1, %v787_v62  ;;  %v1443_v20 = vpop.f32.mrb[5].mxu1 }
 0x1c9   : > { %v1029_v22 = vpop.f32.mrb[6].mxu0 }
 0x1ca   : > { %v1033_v3 = vadd.f32 %v1029_v22, %v910_v2  ;;  %v1462_v4 = vpop.f32.mrb[7].mxu0 }
 0x1cd   : > { %v1152_v5 = vpop.f32.mrb[6].mxu1 }
 0x1ce   : > { %v1156_v9 = vadd.f32 %v1152_v5, %v1033_v3  ;;  %v1481_v11 = vpop.f32.mrb[7].mxu1 }
 0x1d0   : > { %v1163_v12 = vadd.f32 %v1161_v6, %v1156_v9 }
 0x1d2   : > { %1164 = vst [vmem:[%s168_s21] sm:$0xff] %v1163_v12 }
 0x1d3 PF: > { %s13_s12 = sadd.s32 1, %s1884_s12  }
 0x1d4   : > { %p10_p4 = scmp.ge.s32.totalorder %s13_s12, 4  }
 0x1d6   :  { %12 = sbr.rel (!%p10_p4) target bundleno = 1 (0x1), region = 76 }

</bundles_post_ra>
